<compile_context>
chip_gen: v7x
topology: tpu7x:2x2x1
jax: 0.10.0
libtpu: 0.0.40
codegen_flags: <defaults>
</compile_context>

<pallas_src>
import functools

import jax
import jax.numpy as jnp
from jax.experimental import pallas as pl
from jax.experimental.pallas import tpu as pltpu


def _round_up(x, m):
    return ((x + m - 1) // m) * m


# ---------------------------------------------------------------------------
# Fused forward kernel (built from a static layout description)
# ---------------------------------------------------------------------------

def make_tcn_kernel(layout, kernel_size, T, NB, mxu_dtype):
    """Ref order: x, packed-weights, out, pad-scratch."""
    K = kernel_size
    c_max = layout["c_max"]
    pad_top = layout["pad_top"]          # sublane-aligned causal-pad depth
    blocks = layout["blocks"]
    c_last, out_sz, lw_off, lb_off = layout["lin"]

    def kernel(x_ref, w_ref, o_ref, pad_ref):
        # Causal-pad rows: zeroed once per grid step, never overwritten below.
        if pad_top > 0:
            pad_ref[:, :pad_top, :] = jnp.zeros((NB, pad_top, c_max), jnp.float32)

        def conv(h, w_off, b_off, c_in, c_out, d):
            """Causal dilated conv: stage h into the padded VMEM scratch, then do
            K accumulating per-tap matmuls over free ref-view tap slices (no
            materialized pad / im2col temps)."""
            p = (K - 1) * d
            pad_ref[:, pl.ds(pad_top, T), :c_in] = h          # 8-aligned sublane store
            acc = None
            for k in range(K):
                start = pad_top - p + k * d                    # static Python int
                tap = pad_ref[:, pl.ds(start, T), :c_in]       # (NB, T, c_in) view load
                tap2 = tap.reshape(NB * T, c_in).astype(mxu_dtype)
                wk = w_ref[pl.ds(w_off + k * c_in, c_in), :c_out].astype(mxu_dtype)
                part = jnp.dot(tap2, wk, preferred_element_type=jnp.float32)
                acc = part if acc is None else acc + part
            acc = acc + w_ref[pl.ds(b_off, 1), :c_out]         # bias broadcast
            return acc.reshape(NB, T, c_out)

        h = x_ref[...]                                         # (NB, T, C0), already f32

        for blk in blocks:
            d = blk["dilation"]
            c_in, c_out = blk["c_in"], blk["c_out"]
            h1 = jnp.maximum(conv(h, blk["w1"], blk["b1"], c_in, c_out, d), 0.0)
            h2 = jnp.maximum(conv(h1, blk["w2"], blk["b2"], c_out, c_out, d), 0.0)
            if blk["has_ds"]:                                  # 1x1-conv residual
                wd = w_ref[pl.ds(blk["wd"], c_in), :c_out].astype(mxu_dtype)
                res = (jnp.dot(h.reshape(NB * T, c_in).astype(mxu_dtype), wd,
                               preferred_element_type=jnp.float32)
                       + w_ref[pl.ds(blk["bd"], 1), :c_out]).reshape(NB, T, c_out)
            else:                                              # identity residual: VPU add
                res = h
            h = jnp.maximum(h2 + res, 0.0)

        # Last time step + Linear.
        feat = h[:, T - 1, :]                                  # (NB, c_last)
        if out_sz <= 8:
            # Tiny output width: VPU multiply + lane reduce instead of a
            # 1/128-lane-utilization MXU pass.
            cols = []
            for o in range(out_sz):
                wrow = w_ref[pl.ds(lw_off + o, 1), :c_last]    # (1, c_last)
                cols.append(jnp.sum(feat * wrow, axis=-1, keepdims=True))
            out = cols[0] if out_sz == 1 else jnp.concatenate(cols, axis=-1)
        else:
            wmat = w_ref[pl.ds(lw_off, out_sz), :c_last].astype(mxu_dtype)
            out = jax.lax.dot_general(feat.astype(mxu_dtype), wmat,
                                      (((1,), (1,)), ((), ())),
                                      preferred_element_type=jnp.float32)
        out = out + w_ref[pl.ds(lb_off, 1), :out_sz]
        o_ref[...] = out

    return kernel


# ---------------------------------------------------------------------------
# Parameters (effective weight-normed weights, im2col-flattened)
# ---------------------------------------------------------------------------

def init_params(key, num_input, num_channels, kernel_size, output_size):
    """Conv weights stored as (K*C_in, C_out): w_flat[k*C_in + c, o] == w_torch[o, c, k].
    Blocks with C_in == C_out carry no downsample params (identity residual add)."""
    params = {"blocks": []}
    keys = iter(jax.random.split(key, 6 * len(num_channels) + 2))
    c_in = num_input
    for c_out in num_channels:
        blk = {
            "w1": 0.1 * jax.random.normal(next(keys), (kernel_size * c_in, c_out), jnp.float32),
            "b1": 0.1 * jax.random.normal(next(keys), (1, c_out), jnp.float32),
            "w2": 0.1 * jax.random.normal(next(keys), (kernel_size * c_out, c_out), jnp.float32),
            "b2": 0.1 * jax.random.normal(next(keys), (1, c_out), jnp.float32),
        }
        if c_in != c_out:
            blk["wd"] = 0.1 * jax.random.normal(next(keys), (c_in, c_out), jnp.float32)
            blk["bd"] = 0.1 * jax.random.normal(next(keys), (1, c_out), jnp.float32)
        else:
            next(keys); next(keys)   # keep key schedule deterministic
        params["blocks"].append(blk)
        c_in = c_out
    params["lin_w"] = 0.1 * jax.random.normal(next(keys), (num_channels[-1], output_size), jnp.float32)
    params["lin_b"] = 0.1 * jax.random.normal(next(keys), (1, output_size), jnp.float32)
    return params


# ---------------------------------------------------------------------------
# Packing: one lane-padded weight slab + static row offsets
# ---------------------------------------------------------------------------

def _pack_params(params, num_input, kernel_size):
    chans = [num_input] + [int(b["b1"].shape[1]) for b in params["blocks"]]
    out_sz = int(params["lin_w"].shape[1])
    c_max = max(chans + [out_sz])

    chunks = []
    cursor = 0

    def add(arr):
        nonlocal cursor
        r, c = arr.shape
        chunks.append(jnp.pad(arr.astype(jnp.float32), ((0, 0), (0, c_max - c))))
        off = cursor
        cursor += r
        return off

    blocks_meta = []
    c_in = num_input
    for i, blk in enumerate(params["blocks"]):
        c_out = int(blk["b1"].shape[1])
        meta = {"dilation": 2 ** i, "c_in": c_in, "c_out": c_out,
                "w1": add(blk["w1"]), "b1": add(blk["b1"]),
                "w2": add(blk["w2"]), "b2": add(blk["b2"]),
                "has_ds": "wd" in blk}
        if meta["has_ds"]:
            meta["wd"] = add(blk["wd"])
            meta["bd"] = add(blk["bd"])
        blocks_meta.append(meta)
        c_in = c_out

    lw_off = add(params["lin_w"].T)            # transposed: row o holds lin_w[:, o]
    lb_off = add(params["lin_b"])

    p_max = (kernel_size - 1) * (2 ** (len(blocks_meta) - 1))
    layout = {"c_max": c_max,
              "pad_top": _round_up(p_max, 8),  # sublane-aligned staging offset
              "blocks": blocks_meta,
              "lin": (c_in, out_sz, lw_off, lb_off)}
    return jnp.concatenate(chunks, axis=0), layout


def _choose_batch_tile(N, T, target_rows=512):
    """Batch tile NB dividing N with NB*T ~ target MXU rows; NB must be the whole
    batch or a multiple of 8 so the output block-shape stays aligned."""
    if N * T <= target_rows:
        return N
    cap = max(1, target_rows // max(T, 1))
    for d in range(min(N, cap), 0, -1):
        if N % d == 0 and (d == N or d % 8 == 0):
            return d
    return N


# ---------------------------------------------------------------------------
# Forward: all glue is layout only; all math runs inside one pallas_call
# ---------------------------------------------------------------------------

@functools.partial(jax.jit, static_argnames=("num_input", "kernel_size", "mxu_dtype"))
def tcn_model_forward(x, params, num_input, kernel_size, mxu_dtype=jnp.float32):
    N = x.shape[0]
    x = x.reshape(N, num_input, -1)                        # (N, C0, T) -- matches PyTorch reshape
    x = jnp.transpose(x, (0, 2, 1)).astype(jnp.float32)    # NTC: channels on the lane axis
    T = x.shape[1]

    w_packed, layout = _pack_params(params, num_input, kernel_size)
    output_size = layout["lin"][1]

    NB = _choose_batch_tile(N, T)
    grid = (N // NB,)                                      # single step at the demo size

    kernel = make_tcn_kernel(layout, kernel_size, T, NB, mxu_dtype)

    out = pl.pallas_call(
        kernel,
        out_shape=jax.ShapeDtypeStruct((N, output_size), jnp.float32),
        grid=grid,
        in_specs=[
            pl.BlockSpec((NB, T, num_input), lambda g: (g, 0, 0)),
            pl.BlockSpec(w_packed.shape, lambda g: (0, 0)),    # one packed weight slab
        ],
        out_specs=pl.BlockSpec((NB, output_size), lambda g: (g, 0)),
        scratch_shapes=[
            pltpu.VMEM((NB, layout["pad_top"] + T, layout["c_max"]), jnp.float32),
        ],
        # With >=2 grid steps on v7x, pltpu.CORE_PARALLEL here is the real 2-TC lever;
        # "arbitrary" is the safe default across v5e/v6e/v7x.
        compiler_params=pltpu.CompilerParams(dimension_semantics=("arbitrary",)),
    )(x, w_packed)

    return jnp.squeeze(out)                                 # .squeeze(), as in PyTorch


# ---------------------------------------------------------------------------
# Main
# ---------------------------------------------------------------------------

if __name__ == "__main__":
    key = jax.random.PRNGKey(0)
    k_param, k_x = jax.random.split(key)

    N = 2
    num_input = 4
    T = 16
    num_channels = [32, 32]
    kernel_size = 3
    output_size = 1
    # dropout = 0.2  (identity in eval-mode forward)

    params = init_params(k_param, num_input, num_channels, kernel_size, output_size)
    x = jax.random.normal(k_x, (N, num_input * T), jnp.float32)   # flattened features, as qlib feeds them

    y = tcn_model_forward(x, params, num_input=num_input, kernel_size=kernel_size)
    y = jax.block_until_ready(y)
    assert y.shape == (N,), y.shape
    assert y.dtype == jnp.float32, y.dtype
    assert bool(jnp.all(jnp.isfinite(y)))
    print("KERNEL_OK")
</pallas_src>

<mosaic_0001>
module attributes {stable_mosaic.version = 11 : i64} {
  func.func @kernel(%arg0: i32, %arg1: memref<2x16x4xf32, #tpu.memory_space<vmem>>, %arg2: memref<311x32xf32, #tpu.memory_space<vmem>>, %arg3: memref<2x1xf32, #tpu.memory_space<vmem>>, %arg4: memref<2x24x32xf32, #tpu.memory_space<vmem>>) attributes {dimension_semantics = [#tpu.dimension_semantics<arbitrary>], iteration_bounds = array<i64: 1>, scalar_prefetch = 0 : i64, scratch_operands = 1 : i64, tpu.core_type = #tpu.core_type<tc>, window_params = [{transform_indices = @transform_0, window_bounds = array<i64: 2, 16, 4>}, {pipeline_mode = #tpu.pipeline_mode<synchronous>, transform_indices = @transform_1, window_bounds = array<i64: 311, 32>}, {transform_indices = @transform_2, window_bounds = array<i64: 2, 1>}]} {
    %cst = arith.constant 0.000000e+00 : f32
    %0 = vector.broadcast %cst : f32 to vector<2x8x32xf32>
    %c0 = arith.constant 0 : index
    %c0_0 = arith.constant 0 : index
    %c0_1 = arith.constant 0 : index
    %1 = vector.load %arg4[%c0, %c0_0, %c0_1] : memref<2x24x32xf32, #tpu.memory_space<vmem>>, vector<2x8x32xf32>
    tpu.vector_store %arg4[%c0, %c0_0, %c0_1], %0 {strides = array<i32>} : memref<2x24x32xf32, #tpu.memory_space<vmem>>, vector<2x8x32xf32>,
    %c0_2 = arith.constant 0 : index
    %c0_3 = arith.constant 0 : index
    %c0_4 = arith.constant 0 : index
    %2 = vector.load %arg1[%c0_2, %c0_3, %c0_4] : memref<2x16x4xf32, #tpu.memory_space<vmem>>, vector<2x16x4xf32>
    %c0_5 = arith.constant 0 : index
    %c8 = arith.constant 8 : index
    %c0_6 = arith.constant 0 : index
    %3 = vector.load %arg4[%c0_5, %c8, %c0_6] : memref<2x24x32xf32, #tpu.memory_space<vmem>>, vector<2x16x4xf32>
    tpu.vector_store %arg4[%c0_5, %c8, %c0_6], %2 {strides = array<i32>} : memref<2x24x32xf32, #tpu.memory_space<vmem>>, vector<2x16x4xf32>,
    %c0_7 = arith.constant 0 : index
    %c6 = arith.constant 6 : index
    %c0_8 = arith.constant 0 : index
    %4 = vector.load %arg4[%c0_7, %c6, %c0_8] : memref<2x24x32xf32, #tpu.memory_space<vmem>>, vector<2x16x4xf32>
    %5 = vector.shape_cast %4 : vector<2x16x4xf32> to vector<32x4xf32>
    %c0_9 = arith.constant 0 : index
    %c0_10 = arith.constant 0 : index
    %6 = vector.load %arg2[%c0_9, %c0_10] : memref<311x32xf32, #tpu.memory_space<vmem>>, vector<4x32xf32>
    %cst_11 = arith.constant dense<0.000000e+00> : vector<32x32xf32>
    %7 = tpu.matmul %5, %6, %cst_11 {dimension_numbers = #tpu.dot_dimension_numbers<[1], [0], [0], [1], [0, 0, 1, 1], [], []>} : vector<32x4xf32>, vector<4x32xf32>, vector<32x32xf32> -> vector<32x32xf32>
    %c0_12 = arith.constant 0 : index
    %c7 = arith.constant 7 : index
    %c0_13 = arith.constant 0 : index
    %8 = vector.load %arg4[%c0_12, %c7, %c0_13] : memref<2x24x32xf32, #tpu.memory_space<vmem>>, vector<2x16x4xf32>
    %9 = vector.shape_cast %8 : vector<2x16x4xf32> to vector<32x4xf32>
    %c4 = arith.constant 4 : index
    %c0_14 = arith.constant 0 : index
    %10 = vector.load %arg2[%c4, %c0_14] : memref<311x32xf32, #tpu.memory_space<vmem>>, vector<4x32xf32>
    %cst_15 = arith.constant dense<0.000000e+00> : vector<32x32xf32>
    %11 = tpu.matmul %9, %10, %cst_15 {dimension_numbers = #tpu.dot_dimension_numbers<[1], [0], [0], [1], [0, 0, 1, 1], [], []>} : vector<32x4xf32>, vector<4x32xf32>, vector<32x32xf32> -> vector<32x32xf32>
    %12 = arith.addf %7, %11 : vector<32x32xf32>
    %c0_16 = arith.constant 0 : index
    %c8_17 = arith.constant 8 : index
    %c0_18 = arith.constant 0 : index
    %13 = vector.load %arg4[%c0_16, %c8_17, %c0_18] : memref<2x24x32xf32, #tpu.memory_space<vmem>>, vector<2x16x4xf32>
    %14 = vector.shape_cast %13 : vector<2x16x4xf32> to vector<32x4xf32>
    %c8_19 = arith.constant 8 : index
    %c0_20 = arith.constant 0 : index
    %15 = vector.load %arg2[%c8_19, %c0_20] : memref<311x32xf32, #tpu.memory_space<vmem>>, vector<4x32xf32>
    %cst_21 = arith.constant dense<0.000000e+00> : vector<32x32xf32>
    %16 = tpu.matmul %14, %15, %cst_21 {dimension_numbers = #tpu.dot_dimension_numbers<[1], [0], [0], [1], [0, 0, 1, 1], [], []>} : vector<32x4xf32>, vector<4x32xf32>, vector<32x32xf32> -> vector<32x32xf32>
    %17 = arith.addf %12, %16 : vector<32x32xf32>
    %c12 = arith.constant 12 : index
    %c0_22 = arith.constant 0 : index
    %18 = vector.load %arg2[%c12, %c0_22] : memref<311x32xf32, #tpu.memory_space<vmem>>, vector<1x32xf32>
    %19 = vector.broadcast %18 : vector<1x32xf32> to vector<32x32xf32>
    %20 = arith.addf %17, %19 : vector<32x32xf32>
    %21 = vector.shape_cast %20 : vector<32x32xf32> to vector<2x16x32xf32>
    %cst_23 = arith.constant 0.000000e+00 : f32
    %22 = vector.broadcast %cst_23 : f32 to vector<2x16x32xf32>
    %23 = arith.maximumf %21, %22 : vector<2x16x32xf32>
    %c0_24 = arith.constant 0 : index
    %c8_25 = arith.constant 8 : index
    %c0_26 = arith.constant 0 : index
    %24 = vector.load %arg4[%c0_24, %c8_25, %c0_26] : memref<2x24x32xf32, #tpu.memory_space<vmem>>, vector<2x16x32xf32>
    tpu.vector_store %arg4[%c0_24, %c8_25, %c0_26], %23 {strides = array<i32>} : memref<2x24x32xf32, #tpu.memory_space<vmem>>, vector<2x16x32xf32>,
    %c0_27 = arith.constant 0 : index
    %c6_28 = arith.constant 6 : index
    %c0_29 = arith.constant 0 : index
    %25 = vector.load %arg4[%c0_27, %c6_28, %c0_29] : memref<2x24x32xf32, #tpu.memory_space<vmem>>, vector<2x16x32xf32>
    %26 = vector.shape_cast %25 : vector<2x16x32xf32> to vector<32x32xf32>
    %c13 = arith.constant 13 : index
    %c0_30 = arith.constant 0 : index
    %27 = vector.load %arg2[%c13, %c0_30] : memref<311x32xf32, #tpu.memory_space<vmem>>, vector<32x32xf32>
    %cst_31 = arith.constant dense<0.000000e+00> : vector<32x32xf32>
    %28 = tpu.matmul %26, %27, %cst_31 {dimension_numbers = #tpu.dot_dimension_numbers<[1], [0], [0], [1], [0, 0, 1, 1], [], []>} : vector<32x32xf32>, vector<32x32xf32>, vector<32x32xf32> -> vector<32x32xf32>
    %c0_32 = arith.constant 0 : index
    %c7_33 = arith.constant 7 : index
    %c0_34 = arith.constant 0 : index
    %29 = vector.load %arg4[%c0_32, %c7_33, %c0_34] : memref<2x24x32xf32, #tpu.memory_space<vmem>>, vector<2x16x32xf32>
    %30 = vector.shape_cast %29 : vector<2x16x32xf32> to vector<32x32xf32>
    %c45 = arith.constant 45 : index
    %c0_35 = arith.constant 0 : index
    %31 = vector.load %arg2[%c45, %c0_35] : memref<311x32xf32, #tpu.memory_space<vmem>>, vector<32x32xf32>
    %cst_36 = arith.constant dense<0.000000e+00> : vector<32x32xf32>
    %32 = tpu.matmul %30, %31, %cst_36 {dimension_numbers = #tpu.dot_dimension_numbers<[1], [0], [0], [1], [0, 0, 1, 1], [], []>} : vector<32x32xf32>, vector<32x32xf32>, vector<32x32xf32> -> vector<32x32xf32>
    %33 = arith.addf %28, %32 : vector<32x32xf32>
    %c0_37 = arith.constant 0 : index
    %c8_38 = arith.constant 8 : index
    %c0_39 = arith.constant 0 : index
    %34 = vector.load %arg4[%c0_37, %c8_38, %c0_39] : memref<2x24x32xf32, #tpu.memory_space<vmem>>, vector<2x16x32xf32>
    %35 = vector.shape_cast %34 : vector<2x16x32xf32> to vector<32x32xf32>
    %c77 = arith.constant 77 : index
    %c0_40 = arith.constant 0 : index
    %36 = vector.load %arg2[%c77, %c0_40] : memref<311x32xf32, #tpu.memory_space<vmem>>, vector<32x32xf32>
    %cst_41 = arith.constant dense<0.000000e+00> : vector<32x32xf32>
    %37 = tpu.matmul %35, %36, %cst_41 {dimension_numbers = #tpu.dot_dimension_numbers<[1], [0], [0], [1], [0, 0, 1, 1], [], []>} : vector<32x32xf32>, vector<32x32xf32>, vector<32x32xf32> -> vector<32x32xf32>
    %38 = arith.addf %33, %37 : vector<32x32xf32>
    %c109 = arith.constant 109 : index
    %c0_42 = arith.constant 0 : index
    %39 = vector.load %arg2[%c109, %c0_42] : memref<311x32xf32, #tpu.memory_space<vmem>>, vector<1x32xf32>
    %40 = vector.broadcast %39 : vector<1x32xf32> to vector<32x32xf32>
    %41 = arith.addf %38, %40 : vector<32x32xf32>
    %42 = vector.shape_cast %41 : vector<32x32xf32> to vector<2x16x32xf32>
    %cst_43 = arith.constant 0.000000e+00 : f32
    %43 = vector.broadcast %cst_43 : f32 to vector<2x16x32xf32>
    %44 = arith.maximumf %42, %43 : vector<2x16x32xf32>
    %c110 = arith.constant 110 : index
    %c0_44 = arith.constant 0 : index
    %45 = vector.load %arg2[%c110, %c0_44] : memref<311x32xf32, #tpu.memory_space<vmem>>, vector<4x32xf32>
    %46 = vector.shape_cast %2 : vector<2x16x4xf32> to vector<32x4xf32>
    %cst_45 = arith.constant dense<0.000000e+00> : vector<32x32xf32>
    %47 = tpu.matmul %46, %45, %cst_45 {dimension_numbers = #tpu.dot_dimension_numbers<[1], [0], [0], [1], [0, 0, 1, 1], [], []>} : vector<32x4xf32>, vector<4x32xf32>, vector<32x32xf32> -> vector<32x32xf32>
    %c114 = arith.constant 114 : index
    %c0_46 = arith.constant 0 : index
    %48 = vector.load %arg2[%c114, %c0_46] : memref<311x32xf32, #tpu.memory_space<vmem>>, vector<1x32xf32>
    %49 = vector.broadcast %48 : vector<1x32xf32> to vector<32x32xf32>
    %50 = arith.addf %47, %49 : vector<32x32xf32>
    %51 = vector.shape_cast %50 : vector<32x32xf32> to vector<2x16x32xf32>
    %52 = arith.addf %44, %51 : vector<2x16x32xf32>
    %cst_47 = arith.constant 0.000000e+00 : f32
    %53 = vector.broadcast %cst_47 : f32 to vector<2x16x32xf32>
    %54 = arith.maximumf %52, %53 : vector<2x16x32xf32>
    %c0_48 = arith.constant 0 : index
    %c8_49 = arith.constant 8 : index
    %c0_50 = arith.constant 0 : index
    %55 = vector.load %arg4[%c0_48, %c8_49, %c0_50] : memref<2x24x32xf32, #tpu.memory_space<vmem>>, vector<2x16x32xf32>
    tpu.vector_store %arg4[%c0_48, %c8_49, %c0_50], %54 {strides = array<i32>} : memref<2x24x32xf32, #tpu.memory_space<vmem>>, vector<2x16x32xf32>,
    %c0_51 = arith.constant 0 : index
    %c4_52 = arith.constant 4 : index
    %c0_53 = arith.constant 0 : index
    %56 = vector.load %arg4[%c0_51, %c4_52, %c0_53] : memref<2x24x32xf32, #tpu.memory_space<vmem>>, vector<2x16x32xf32>
    %57 = vector.shape_cast %56 : vector<2x16x32xf32> to vector<32x32xf32>
    %c115 = arith.constant 115 : index
    %c0_54 = arith.constant 0 : index
    %58 = vector.load %arg2[%c115, %c0_54] : memref<311x32xf32, #tpu.memory_space<vmem>>, vector<32x32xf32>
    %cst_55 = arith.constant dense<0.000000e+00> : vector<32x32xf32>
    %59 = tpu.matmul %57, %58, %cst_55 {dimension_numbers = #tpu.dot_dimension_numbers<[1], [0], [0], [1], [0, 0, 1, 1], [], []>} : vector<32x32xf32>, vector<32x32xf32>, vector<32x32xf32> -> vector<32x32xf32>
    %c0_56 = arith.constant 0 : index
    %c6_57 = arith.constant 6 : index
    %c0_58 = arith.constant 0 : index
    %60 = vector.load %arg4[%c0_56, %c6_57, %c0_58] : memref<2x24x32xf32, #tpu.memory_space<vmem>>, vector<2x16x32xf32>
    %61 = vector.shape_cast %60 : vector<2x16x32xf32> to vector<32x32xf32>
    %c147 = arith.constant 147 : index
    %c0_59 = arith.constant 0 : index
    %62 = vector.load %arg2[%c147, %c0_59] : memref<311x32xf32, #tpu.memory_space<vmem>>, vector<32x32xf32>
    %cst_60 = arith.constant dense<0.000000e+00> : vector<32x32xf32>
    %63 = tpu.matmul %61, %62, %cst_60 {dimension_numbers = #tpu.dot_dimension_numbers<[1], [0], [0], [1], [0, 0, 1, 1], [], []>} : vector<32x32xf32>, vector<32x32xf32>, vector<32x32xf32> -> vector<32x32xf32>
    %64 = arith.addf %59, %63 : vector<32x32xf32>
    %c0_61 = arith.constant 0 : index
    %c8_62 = arith.constant 8 : index
    %c0_63 = arith.constant 0 : index
    %65 = vector.load %arg4[%c0_61, %c8_62, %c0_63] : memref<2x24x32xf32, #tpu.memory_space<vmem>>, vector<2x16x32xf32>
    %66 = vector.shape_cast %65 : vector<2x16x32xf32> to vector<32x32xf32>
    %c179 = arith.constant 179 : index
    %c0_64 = arith.constant 0 : index
    %67 = vector.load %arg2[%c179, %c0_64] : memref<311x32xf32, #tpu.memory_space<vmem>>, vector<32x32xf32>
    %cst_65 = arith.constant dense<0.000000e+00> : vector<32x32xf32>
    %68 = tpu.matmul %66, %67, %cst_65 {dimension_numbers = #tpu.dot_dimension_numbers<[1], [0], [0], [1], [0, 0, 1, 1], [], []>} : vector<32x32xf32>, vector<32x32xf32>, vector<32x32xf32> -> vector<32x32xf32>
    %69 = arith.addf %64, %68 : vector<32x32xf32>
    %c211 = arith.constant 211 : index
    %c0_66 = arith.constant 0 : index
    %70 = vector.load %arg2[%c211, %c0_66] : memref<311x32xf32, #tpu.memory_space<vmem>>, vector<1x32xf32>
    %71 = vector.broadcast %70 : vector<1x32xf32> to vector<32x32xf32>
    %72 = arith.addf %69, %71 : vector<32x32xf32>
    %73 = vector.shape_cast %72 : vector<32x32xf32> to vector<2x16x32xf32>
    %cst_67 = arith.constant 0.000000e+00 : f32
    %74 = vector.broadcast %cst_67 : f32 to vector<2x16x32xf32>
    %75 = arith.maximumf %73, %74 : vector<2x16x32xf32>
    %c0_68 = arith.constant 0 : index
    %c8_69 = arith.constant 8 : index
    %c0_70 = arith.constant 0 : index
    %76 = vector.load %arg4[%c0_68, %c8_69, %c0_70] : memref<2x24x32xf32, #tpu.memory_space<vmem>>, vector<2x16x32xf32>
    tpu.vector_store %arg4[%c0_68, %c8_69, %c0_70], %75 {strides = array<i32>} : memref<2x24x32xf32, #tpu.memory_space<vmem>>, vector<2x16x32xf32>,
    %c0_71 = arith.constant 0 : index
    %c4_72 = arith.constant 4 : index
    %c0_73 = arith.constant 0 : index
    %77 = vector.load %arg4[%c0_71, %c4_72, %c0_73] : memref<2x24x32xf32, #tpu.memory_space<vmem>>, vector<2x16x32xf32>
    %78 = vector.shape_cast %77 : vector<2x16x32xf32> to vector<32x32xf32>
    %c212 = arith.constant 212 : index
    %c0_74 = arith.constant 0 : index
    %79 = vector.load %arg2[%c212, %c0_74] : memref<311x32xf32, #tpu.memory_space<vmem>>, vector<32x32xf32>
    %cst_75 = arith.constant dense<0.000000e+00> : vector<32x32xf32>
    %80 = tpu.matmul %78, %79, %cst_75 {dimension_numbers = #tpu.dot_dimension_numbers<[1], [0], [0], [1], [0, 0, 1, 1], [], []>} : vector<32x32xf32>, vector<32x32xf32>, vector<32x32xf32> -> vector<32x32xf32>
    %c0_76 = arith.constant 0 : index
    %c6_77 = arith.constant 6 : index
    %c0_78 = arith.constant 0 : index
    %81 = vector.load %arg4[%c0_76, %c6_77, %c0_78] : memref<2x24x32xf32, #tpu.memory_space<vmem>>, vector<2x16x32xf32>
    %82 = vector.shape_cast %81 : vector<2x16x32xf32> to vector<32x32xf32>
    %c244 = arith.constant 244 : index
    %c0_79 = arith.constant 0 : index
    %83 = vector.load %arg2[%c244, %c0_79] : memref<311x32xf32, #tpu.memory_space<vmem>>, vector<32x32xf32>
    %cst_80 = arith.constant dense<0.000000e+00> : vector<32x32xf32>
    %84 = tpu.matmul %82, %83, %cst_80 {dimension_numbers = #tpu.dot_dimension_numbers<[1], [0], [0], [1], [0, 0, 1, 1], [], []>} : vector<32x32xf32>, vector<32x32xf32>, vector<32x32xf32> -> vector<32x32xf32>
    %85 = arith.addf %80, %84 : vector<32x32xf32>
    %c0_81 = arith.constant 0 : index
    %c8_82 = arith.constant 8 : index
    %c0_83 = arith.constant 0 : index
    %86 = vector.load %arg4[%c0_81, %c8_82, %c0_83] : memref<2x24x32xf32, #tpu.memory_space<vmem>>, vector<2x16x32xf32>
    %87 = vector.shape_cast %86 : vector<2x16x32xf32> to vector<32x32xf32>
    %c276 = arith.constant 276 : index
    %c0_84 = arith.constant 0 : index
    %88 = vector.load %arg2[%c276, %c0_84] : memref<311x32xf32, #tpu.memory_space<vmem>>, vector<32x32xf32>
    %cst_85 = arith.constant dense<0.000000e+00> : vector<32x32xf32>
    %89 = tpu.matmul %87, %88, %cst_85 {dimension_numbers = #tpu.dot_dimension_numbers<[1], [0], [0], [1], [0, 0, 1, 1], [], []>} : vector<32x32xf32>, vector<32x32xf32>, vector<32x32xf32> -> vector<32x32xf32>
    %90 = arith.addf %85, %89 : vector<32x32xf32>
    %c308 = arith.constant 308 : index
    %c0_86 = arith.constant 0 : index
    %91 = vector.load %arg2[%c308, %c0_86] : memref<311x32xf32, #tpu.memory_space<vmem>>, vector<1x32xf32>
    %92 = vector.broadcast %91 : vector<1x32xf32> to vector<32x32xf32>
    %93 = arith.addf %90, %92 : vector<32x32xf32>
    %94 = vector.shape_cast %93 : vector<32x32xf32> to vector<2x16x32xf32>
    %cst_87 = arith.constant 0.000000e+00 : f32
    %95 = vector.broadcast %cst_87 : f32 to vector<2x16x32xf32>
    %96 = arith.maximumf %94, %95 : vector<2x16x32xf32>
    %97 = arith.addf %96, %54 : vector<2x16x32xf32>
    %cst_88 = arith.constant 0.000000e+00 : f32
    %98 = vector.broadcast %cst_88 : f32 to vector<2x16x32xf32>
    %99 = arith.maximumf %97, %98 : vector<2x16x32xf32>
    %100 = vector.extract_strided_slice %99 {offsets = [0, 15, 0], sizes = [2, 1, 32], strides = [1, 1, 1]} : vector<2x16x32xf32> to vector<2x1x32xf32>
    %101 = vector.shape_cast %100 : vector<2x1x32xf32> to vector<2x32xf32>
    %c309 = arith.constant 309 : index
    %c0_89 = arith.constant 0 : index
    %102 = vector.load %arg2[%c309, %c0_89] : memref<311x32xf32, #tpu.memory_space<vmem>>, vector<1x32xf32>
    %103 = vector.broadcast %102 : vector<1x32xf32> to vector<2x32xf32>
    %104 = arith.mulf %101, %103 : vector<2x32xf32>
    %cst_90 = arith.constant dense<0.000000e+00> : vector<2xf32>
    %105 = vector.multi_reduction <add>, %104, %cst_90 [1] : vector<2x32xf32> to vector<2xf32>
    %106 = vector.shape_cast %105 : vector<2xf32> to vector<2x1xf32>
    %c310 = arith.constant 310 : index
    %c0_91 = arith.constant 0 : index
    %107 = vector.load %arg2[%c310, %c0_91] : memref<311x32xf32, #tpu.memory_space<vmem>>, vector<1x1xf32>
    %108 = vector.broadcast %107 : vector<1x1xf32> to vector<2x1xf32>
    %109 = arith.addf %106, %108 : vector<2x1xf32>
    %c0_92 = arith.constant 0 : index
    %c0_93 = arith.constant 0 : index
    %110 = vector.load %arg3[%c0_92, %c0_93] : memref<2x1xf32, #tpu.memory_space<vmem>>, vector<2x1xf32>
    tpu.vector_store %arg3[%c0_92, %c0_93], %109 {strides = array<i32>} : memref<2x1xf32, #tpu.memory_space<vmem>>, vector<2x1xf32>,
    return
  }
  func.func @transform_0(%arg0: i32) -> (i32, i32, i32) {
    %c0_i32 = arith.constant 0 : i32
    %c0_i32_0 = arith.constant 0 : i32
    %c0_i32_1 = arith.constant 0 : i32
    return %arg0, %c0_i32, %c0_i32_0 : i32, i32, i32
  }
  func.func @transform_1(%arg0: i32) -> (i32, i32) {
    %c0_i32 = arith.constant 0 : i32
    %c0_i32_0 = arith.constant 0 : i32
    %c0_i32_1 = arith.constant 0 : i32
    return %c0_i32, %c0_i32_0 : i32, i32
  }
  func.func @transform_2(%arg0: i32) -> (i32, i32) {
    %c0_i32 = arith.constant 0 : i32
    %c0_i32_0 = arith.constant 0 : i32
    return %arg0, %c0_i32 : i32, i32
  }
}

</mosaic_0001>

<bundles_post_ra>
// kernel: tcn_model_forward.1
= control target key start
LH: loop header
LB: loop body
LE: loop exit
PB: predicated region body
PF: predicated region fallthrough
CT: control target
= control target key end

     0   :  { %vm45_vm0 = vcmask 1043456   ;;  %vm11_vm1 = vcmask 261120   ;;  %vm18_vm2 = vcmask 31744   ;;  %v1915_v1 = vmov 0.0   ;;  %s2182_s1 = inlined_call_operand.vmem [shape: f32[311,32], index: 1, kind: input, shape index: {}]   ;;  %s2183_s0 = inlined_call_operand.vmem [shape: f32[2,16,4], index: 0, kind: input, shape index: {}]   ;;  %s2184_s2 = inlined_call_operand.vmem [shape: f32[2,1], index: 2, kind: output, shape index: {}]  }
   0x1   :  { %v32_v0 = vld [vmem:[%s2182_s1 + $0x4] sm:$0xf]  ;;  %12 = vst.msk [vmem:[#allocation2] sm:$0xff] %vm11_vm1, %v1915_v1  ;;  %v15_v3 = vld [vmem:[%s2183_s0 + $0x8] sm:$0xff]  ;;  %13 = vst.msk [vmem:[#allocation2 + $0x18] sm:$0xff] %vm11_vm1, %v1915_v1  ;;  %vm1482_vm3 = vcmask 261127  }
   0x2   :  { %v14_v2 = vld [vmem:[%s2183_s0] sm:$0xff]  ;;  %1660 = vmatprep.subr.msk.mxu0 %vm45_vm0, %v32_v0  ;;  %v17_v4 = vld [vmem:[%s2183_s0 + $0x18] sm:$0xff]  ;;  %20 = vst.msk [vmem:[#allocation2 + $0x10] sm:$0xff] %vm18_vm2, %v15_v3  ;;  %v16_v6 = vld [vmem:[%s2183_s0 + $0x10] sm:$0xff]  ;;  %vm1486_vm4 = vcmask 253952   ;;  %vm1497_vm5 = vcmask 7175  }
   0x3   :  { %19 = vst.msk [vmem:[#allocation2 + $0x8] sm:$0xff] %vm18_vm2, %v14_v2  ;;  %v27_v5 = vld [vmem:[%s2182_s1] sm:$0xf]  ;;  %1661 = vmatpush3.msk.msra.mxu0 %vm45_vm0, %v32_v0  ;;  %22 = vst.msk [vmem:[#allocation2 + $0x28] sm:$0xff] %vm18_vm2, %v17_v4  ;;  %v238_v10 = vld [vmem:[%s2182_s1 + $0x8] sm:$0xf] }
   0x4   :  { %21 = vst.msk [vmem:[#allocation2 + $0x20] sm:$0xff] %vm18_vm2, %v16_v6  ;;  %1668 = vmatprep.subr.msk.mxu0 %vm45_vm0, %v27_v5  ;;  %v372_v20 = vld [vmem:[%s2182_s1 + $0x2d] sm:$0xff]  ;;  %v373_v21 = vld [vmem:[%s2182_s1 + $0x35] sm:$0xff]  ;;  %v374_v23 = vld [vmem:[%s2182_s1 + $0x3d] sm:$0xff]  ;;  %vm1499_vm6 = vcmask 0  }
   0x5   :  { %v1818_v22 = vpack.c.bf16 %v373_v21, %v372_v20  ;;  %v375_v24 = vld [vmem:[%s2182_s1 + $0x45] sm:$0xff]  ;;  %v364_v26 = vld [vmem:[%s2182_s1 + $0xd] sm:$0xff]  ;;  %v365_v27 = vld [vmem:[%s2182_s1 + $0x15] sm:$0xff] }
   0x6   :  { %v1822_v25 = vpack.c.bf16 %v375_v24, %v374_v23  ;;  %v1826_v28 = vpack.c.bf16 %v365_v27, %v364_v26  ;;  %v692_v29 = vld [vmem:[%s2182_s1 + $0x6e] sm:$0xf]  ;;  %v1520_v30 = vld [vmem:[%s2182_s1 + $0xc] ss:$0 sm:$0xff]  ;;  %v366_v43 = vld [vmem:[%s2182_s1 + $0x1d] sm:$0xff] }
   0x7   :  { %1819 = vmatprep.subr.bf16.mxu1 %v1818_v22  ;;  %v367_v44 = vld [vmem:[%s2182_s1 + $0x25] sm:$0xff]  ;;  %v574_v48 = vld [vmem:[%s2182_s1 + $0x4d] sm:$0xff]  ;;  %v575_v49 = vld [vmem:[%s2182_s1 + $0x55] sm:$0xff] }
   0x8   :  { %1821 = vmatpush3.bf16.msra.mxu1 %v1818_v22  ;;  %v1830_v47 = vpack.c.bf16 %v367_v44, %v366_v43  ;;  %v1834_v52 = vpack.c.bf16 %v575_v49, %v574_v48  ;;  %v576_v53 = vld [vmem:[%s2182_s1 + $0x5d] sm:$0xff]  ;;  %v577_v54 = vld [vmem:[%s2182_s1 + $0x65] sm:$0xff]  ;;  %v1024_v44 = vld [vmem:[%s2182_s1 + $0xb3] sm:$0xff] }
   0x9   :  { %v235_v17 = vld [vmem:[#allocation2 + $0x10] sm:$0xff]  ;;  %1823 = vmatprep.subr.bf16.mxu1 %v1822_v25  ;;  %v1838_v56 = vpack.c.bf16 %v577_v54, %v576_v53  ;;  %v1026_v49 = vld [vmem:[%s2182_s1 + $0xc3] sm:$0xff] }
   0xa   :  { %v28_v7 = vld [vmem:[#allocation2 + $0x7] sm:$0xff]  ;;  %v29_v8 = vld [vmem:[#allocation2 + $0xf] sm:$0xff] }
   0xb   :  { %1662 = vmatprep.mubr.msk.f32.mxu0 %vm18_vm2, %v28_v7  ;;  %v30_v9 = vld [vmem:[#allocation2 + $0x1f] sm:$0xff]  ;;  %v31_v11 = vld [vmem:[#allocation2 + $0x27] sm:$0xff] }
   0xc   :  { %1663 = vmatmul.mubr.msk.f32.vlgmr.msra.gmra.mrb[0].mxu0 %vm18_vm2, %v29_v8  ;;  %v23_v12 = vld [vmem:[#allocation2 + $0x6] sm:$0xff]  ;;  %v24_v13 = vld [vmem:[#allocation2 + $0xe] sm:$0xff]  ;;  %v25_v14 = vld [vmem:[#allocation2 + $0x1e] sm:$0xff]  ;;  %1825 = vmatpush3.bf16.msra.mxu1 %v1822_v25 }
   0xd   :  { %1669 = vmatpush3.msk.msra.mxu0 %vm45_vm0, %v27_v5  ;;  %1665 = vmatprep.mubr.msk.f32.mxu0 %vm18_vm2, %v30_v9  ;;  %v26_v15 = vld [vmem:[#allocation2 + $0x26] sm:$0xff]  ;;  %v823_v5 = vld [vmem:[%s2182_s1 + $0x9b] sm:$0xff] }
   0xe   :  { %1676 = vmatprep.subr.msk.mxu0 %vm45_vm0, %v238_v10  ;;  %v234_v16 = vld [vmem:[#allocation2 + $0x8] sm:$0xff]  ;;  %v236_v18 = vld [vmem:[#allocation2 + $0x20] sm:$0xff]  ;;  %1827 = vmatprep.subr.bf16.mxu1 %v1826_v28 }
   0xf   :  { %v237_v19 = vld [vmem:[#allocation2 + $0x28] sm:$0xff] }
  0x10   :  { %1666 = vmatmul.mubr.msk.f32.gmra.mrb[2].mxu0 %vm18_vm2, %v31_v11  ;;  %v824_v7 = vld [vmem:[%s2182_s1 + $0xa3] sm:$0xff]  ;;  %v825_v8 = vld [vmem:[%s2182_s1 + $0xab] sm:$0xff]  ;;  %v815_v11 = vld [vmem:[%s2182_s1 + $0x7b] sm:$0xff] }
  0x11   :  { %1670 = vmatprep.mubr.msk.f32.mxu0 %vm18_vm2, %v23_v12  ;;  %v1846_v9 = vpack.c.bf16 %v825_v8, %v824_v7 }
  0x14   :  { %1671 = vmatmul.mubr.msk.f32.vlgmr.msra.gmra.mrb[0].mxu0 %vm18_vm2, %v24_v13  ;;  %v1533_v13 = vld [vmem:[%s2182_s1 + $0x6d] ss:$0 sm:$0xff] }
  0x15   :  { %1677 = vmatpush3.msk.msra.mxu0 %vm45_vm0, %v238_v10  ;;  %1673 = vmatprep.mubr.msk.f32.mxu0 %vm18_vm2, %v25_v14  ;;  %v814_v10 = vld [vmem:[%s2182_s1 + $0x73] sm:$0xff]  ;;  %v1534_v14 = vld [vmem:[%s2182_s1 + $0x72] ss:$0 sm:$0xff] }
  0x16   :  { %1726 = vmatprep.subr.msk.mxu0 %vm45_vm0, %v692_v29  ;;  %v1850_v12 = vpack.c.bf16 %v815_v11, %v814_v10 }
  0x18   :  { %1674 = vmatmul.mubr.msk.f32.gmra.mrb[2].mxu0 %vm18_vm2, %v26_v15 }
  0x19   :  { %1678 = vmatprep.mubr.msk.f32.mxu0 %vm18_vm2, %v234_v16 }
  0x1c   :  { %1679 = vmatmul.mubr.msk.f32.vlgmr.msra.gmra.mrb[0].mxu0 %vm18_vm2, %v235_v17 }
  0x1d   :  { %1681 = vmatprep.mubr.msk.f32.mxu0 %vm18_vm2, %v236_v18  ;;  %1727 = vmatpush3.msk.msra.mxu0 %vm45_vm0, %v692_v29 }
  0x20   :  { %1682 = vmatmul.mubr.msk.f32.gmra.mrb[2].mxu0 %vm18_vm2, %v237_v19 }
  0x21   :  { %1728 = vmatprep.mubr.msk.f32.mxu0 %vm18_vm2, %v14_v2 }
  0x24   :  { %1729 = vmatmul.mubr.msk.f32.vlgmr.msra.gmra.mrb[4].mxu0 %vm18_vm2, %v15_v3 }
  0x25   :  { %1731 = vmatprep.mubr.msk.f32.mxu0 %vm18_vm2, %v16_v6 }
  0x28   :  { %1732 = vmatmul.mubr.msk.f32.gmra.mrb[6].mxu0 %vm18_vm2, %v17_v4  ;;  %v822_v4 = vld [vmem:[%s2182_s1 + $0x93] sm:$0xff] }
  0x29   :  { %v1842_v6 = vpack.c.bf16 %v823_v5, %v822_v4  ;;  %v1552_v5 = vld [vmem:[%s2182_s1 + $0xd3] ss:$0 sm:$0xff] }
  0xef   :  { %v1680_v31 = vpop.f32.mrb[0].mxu0 }
  0xf0   :  { %v349_v32 = vadd.f32 %v1680_v31, %v1520_v30  ;;  %v320_v33 = vpop.f32.mrb[1].mxu0 }
  0xf1   :  { %v348_v34 = vadd.f32 %v1520_v30, %v320_v33 }
  0xf2   :  { %v353_v35 = vmax.f32 %v349_v32, 0.0 }
  0xf3   :  { %v352_v36 = vmax.f32 %v348_v34, 0.0  ;;  %v1683_v37 = vpop.f32.mrb[2].mxu0 }
  0xf4   :  { %357 = vst.msk [vmem:[#allocation2 + $0x10] sm:$0xff] %vm11_vm1, %v353_v35  ;;  %v351_v38 = vadd.f32 %v1683_v37, %v1520_v30  ;;  %v330_v39 = vpop.f32.mrb[3].mxu0 }
  0xf5   :  { %356 = vst.msk [vmem:[#allocation2 + $0x8] sm:$0xff] %vm11_vm1, %v352_v36  ;;  %v350_v40 = vadd.f32 %v1520_v30, %v330_v39  ;;  %v816_v39 = vld [vmem:[%s2182_s1 + $0x83] sm:$0xff] }
  0xf6   :  { %v355_v41 = vmax.f32 %v351_v38, 0.0 }
  0xf7   :  { %v354_v42 = vmax.f32 %v350_v40, 0.0  ;;  %v1730_v0 = vpop.f32.mrb[4].mxu0  ;;  %v817_v40 = vld [vmem:[%s2182_s1 + $0x8b] sm:$0xff] }
  0xf8   :  { %359 = vst.msk [vmem:[#allocation2 + $0x28] sm:$0xff] %vm11_vm1, %v355_v41  ;;  %v779_v1 = vpop.f32.mrb[5].mxu0  ;;  %v785_v18 = vadd.f32 %v1730_v0, %v1534_v14  ;;  %v1854_v43 = vpack.c.bf16 %v817_v40, %v816_v39  ;;  %v1161_v0 = vld [vmem:[%s2182_s1 + $0x10c] sm:$0xff] }
  0xf9   :  { %358 = vst.msk [vmem:[#allocation2 + $0x20] sm:$0xff] %vm11_vm1, %v354_v42  ;;  %v780_v20 = vadd.f32 %v1534_v14, %v779_v1 }
  0xfb   :  { %v571_v61 = vld [vmem:[#allocation2 + $0x10] sm:$0xff]  ;;  %v1733_v2 = vpop.f32.mrb[6].mxu0 }
  0xfc   :  { %v368_v45 = vld [vmem:[#allocation2 + $0x7] sm:$0xff]  ;;  %v369_v46 = vld [vmem:[#allocation2 + $0xf] sm:$0xff]  ;;  %v789_v3 = vpop.f32.mrb[7].mxu0  ;;  %v795_v27 = vadd.f32 %v1733_v2, %v1534_v14 }
  0xfd   :  { %1692 = vmatprep.mubr.msk.f32.mxu1 %vm11_vm1, %v368_v45  ;;  %v360_v55 = vld [vmem:[#allocation2 + $0x6] sm:$0xff]  ;;  %v361_v57 = vld [vmem:[#allocation2 + $0xe] sm:$0xff]  ;;  %v790_v30 = vadd.f32 %v1534_v14, %v789_v3  ;;  %v1025_v45 = vld [vmem:[%s2182_s1 + $0xbb] sm:$0xff] }
  0xfe   :  { %1693 = vmatmul.mubr.msk.f32.vlgmr.msra.gmra.mrb[0].mxu1 %vm11_vm1, %v369_v46  ;;  %v570_v60 = vld [vmem:[#allocation2 + $0x8] sm:$0xff]  ;;  %v1858_v48 = vpack.c.bf16 %v1025_v45, %v1024_v44  ;;  %v1150_v2 = vld [vmem:[%s2182_s1 + $0xd4] sm:$0xff]  ;;  %v1151_v3 = vld [vmem:[%s2182_s1 + $0xdc] sm:$0xff] }
  0xff   :  { %1829 = vmatpush3.bf16.msra.mxu1 %v1826_v28  ;;  %v573_v63 = vld [vmem:[#allocation2 + $0x28] sm:$0xff]  ;;  %v1874_v4 = vpack.c.bf16 %v1151_v3, %v1150_v2 }
 0x100   :  { %v370_v50 = vld [vmem:[#allocation2 + $0x1f] sm:$0xff]  ;;  %1831 = vmatprep.subr.bf16.mxu1 %v1830_v47  ;;  %v371_v51 = vld [vmem:[#allocation2 + $0x27] sm:$0xff] }
 0x101   :  { %1695 = vmatprep.mubr.msk.f32.mxu1 %vm11_vm1, %v370_v50  ;;  %v362_v58 = vld [vmem:[#allocation2 + $0x1e] sm:$0xff]  ;;  %v363_v59 = vld [vmem:[#allocation2 + $0x26] sm:$0xff] }
 0x102   :  { %1696 = vmatmul.mubr.msk.f32.gmra.mrb[2].mxu1 %vm11_vm1, %v371_v51  ;;  %v572_v62 = vld [vmem:[#allocation2 + $0x20] sm:$0xff]  ;;  %v1027_v50 = vld [vmem:[%s2182_s1 + $0xcb] sm:$0xff] }
 0x103   :  { %1833 = vmatpush3.bf16.msra.mxu1 %v1830_v47  ;;  %1706 = vmatprep.mubr.msk.f32.mxu1 %vm11_vm1, %v360_v55 }
 0x104   :  { %1835 = vmatprep.subr.bf16.mxu1 %v1834_v52 }
 0x106   :  { %1707 = vmatmul.mubr.msk.f32.vlgmr.msra.gmra.mrb[0].mxu1 %vm11_vm1, %v361_v57 }
 0x107   :  { %1837 = vmatpush3.bf16.msra.mxu1 %v1834_v52  ;;  %1709 = vmatprep.mubr.msk.f32.mxu1 %vm11_vm1, %v362_v58  ;;  %v1862_v52 = vpack.c.bf16 %v1027_v50, %v1026_v49 }
 0x108   :  { %1839 = vmatprep.subr.bf16.mxu1 %v1838_v56 }
 0x10a   :  { %1710 = vmatmul.mubr.msk.f32.gmra.mrb[2].mxu1 %vm11_vm1, %v363_v59 }
 0x10b   :  { %1841 = vmatpush3.bf16.msra.mxu1 %v1838_v56  ;;  %1720 = vmatprep.mubr.msk.f32.mxu1 %vm11_vm1, %v570_v60  ;;  %v1158_v60 = vld [vmem:[%s2182_s1 + $0xf4] sm:$0xff] }
 0x10c   :  { %1843 = vmatprep.subr.bf16.mxu1 %v1842_v6 }
 0x10e   :  { %1721 = vmatmul.mubr.msk.f32.vlgmr.msra.gmra.mrb[0].mxu1 %vm11_vm1, %v571_v61  ;;  %v1159_v61 = vld [vmem:[%s2182_s1 + $0xfc] sm:$0xff] }
 0x10f   :  { %1723 = vmatprep.mubr.msk.f32.mxu1 %vm11_vm1, %v572_v62  ;;  %1845 = vmatpush3.bf16.msra.mxu1 %v1842_v6  ;;  %v1866_v62 = vpack.c.bf16 %v1159_v61, %v1158_v60 }
 0x110   :  { %1847 = vmatprep.subr.bf16.mxu1 %v1846_v9 }
 0x111   :  { %1867 = vmatprep.subr.bf16.mxu0 %v1866_v62 }
 0x112   :  { %1724 = vmatmul.mubr.msk.f32.gmra.mrb[2].mxu1 %vm11_vm1, %v573_v63  ;;  %1869 = vmatpush3.bf16.msra.mxu0 %v1866_v62  ;;  %v1160_v63 = vld [vmem:[%s2182_s1 + $0x104] sm:$0xff] }
 0x113   :  { %1849 = vmatpush3.bf16.msra.mxu1 %v1846_v9  ;;  %v1870_v1 = vpack.c.bf16 %v1161_v0, %v1160_v63  ;;  %v1566_v0 = vld [vmem:[%s2182_s1 + $0x135] ss:$0 sm:$0xff] }
 0x114   :  { %1851 = vmatprep.subr.bf16.mxu1 %v1850_v12 }
 0x115   :  { %1871 = vmatprep.subr.bf16.mxu0 %v1870_v1 }
 0x116   :  { %1873 = vmatpush3.bf16.msra.mxu0 %v1870_v1 }
 0x117   :  { %1875 = vmatprep.subr.bf16.mxu0 %v1874_v4 }
 0x1e1   :  { %v1722_v15 = vpop.f32.mrb[0].mxu1 }
 0x1e2   :  { %v685_v16 = vadd.f32 %v1722_v15, %v1533_v13  ;;  %v656_v17 = vpop.f32.mrb[1].mxu1 }
 0x1e3   :  { %v684_v19 = vadd.f32 %v1533_v13, %v656_v17 }
 0x1e4   :  { %v689_v21 = vmax.f32 %v685_v16, 0.0 }
 0x1e5   :  { %v688_v22 = vmax.f32 %v684_v19, 0.0  ;;  %v1725_v23 = vpop.f32.mrb[2].mxu1  ;;  %v1153_v19 = vld [vmem:[%s2182_s1 + $0xec] sm:$0xff] }
 0x1e6   :  { %v2064_v24 = vadd.f32 %v785_v18, %v689_v21  ;;  %v687_v25 = vadd.f32 %v1725_v23, %v1533_v13  ;;  %v666_v26 = vpop.f32.mrb[3].mxu1  ;;  %v1152_v18 = vld [vmem:[%s2182_s1 + $0xe4] sm:$0xff]  ;;  %v1356_v23 = vld [vmem:[%s2182_s1 + $0x114] sm:$0xff] }
 0x1e7   :  { %v798_v28 = vadd.f32 %v780_v20, %v688_v22  ;;  %v686_v29 = vadd.f32 %v1533_v13, %v666_v26  ;;  %v1878_v22 = vpack.c.bf16 %v1153_v19, %v1152_v18 }
 0x1e8   :  { %v803_v31 = vmax.f32 %v2064_v24, 0.0  ;;  %v691_v32 = vmax.f32 %v687_v25, 0.0  ;;  %v1357_v25 = vld [vmem:[%s2182_s1 + $0x11c] sm:$0xff]  ;;  %v1567_v24 = vld [vmem:[%s2182_s1 + $0x136] ss:$0 sm:$0xff] }
 0x1e9   :  { %v802_v33 = vmax.f32 %v798_v28, 0.0  ;;  %v690_v34 = vmax.f32 %v686_v29, 0.0  ;;  %v1882_v28 = vpack.c.bf16 %v1357_v25, %v1356_v23  ;;  %v1358_v29 = vld [vmem:[%s2182_s1 + $0x124] sm:$0xff] }
 0x1ea   :  { %807 = vst.msk [vmem:[#allocation2 + $0x10] sm:$0xff] %vm11_vm1, %v803_v31  ;;  %v2070_v35 = vadd.f32 %v795_v27, %v691_v32 }
 0x1eb   :  { %806 = vst.msk [vmem:[#allocation2 + $0x8] sm:$0xff] %vm11_vm1, %v802_v33  ;;  %v800_v36 = vadd.f32 %v790_v30, %v690_v34  ;;  %v1359_v30 = vld [vmem:[%s2182_s1 + $0x12c] sm:$0xff] }
 0x1ec   :  { %v805_v37 = vmax.f32 %v2070_v35, 0.0  ;;  %v1886_v33 = vpack.c.bf16 %v1359_v30, %v1358_v29 }
 0x1ed   :  { %v804_v38 = vmax.f32 %v800_v36, 0.0 }
 0x1ee   :  { %809 = vst.msk [vmem:[#allocation2 + $0x28] sm:$0xff] %vm11_vm1, %v805_v37 }
 0x1ef   :  { %808 = vst.msk [vmem:[#allocation2 + $0x20] sm:$0xff] %vm11_vm1, %v804_v38 }
 0x1f1   :  { %v1021_v57 = vld [vmem:[#allocation2 + $0x10] sm:$0xff] }
 0x1f2   :  { %v818_v41 = vld [vmem:[#allocation2 + $0x6] sm:$0xff]  ;;  %v819_v42 = vld [vmem:[#allocation2 + $0xe] sm:$0xff] }
 0x1f3   :  { %1742 = vmatprep.mubr.msk.f32.mxu1 %vm11_vm1, %v818_v41  ;;  %v810_v51 = vld [vmem:[#allocation2 + $0x4] sm:$0xff]  ;;  %v811_v53 = vld [vmem:[#allocation2 + $0xc] sm:$0xff] }
 0x1f4   :  { %1743 = vmatmul.mubr.msk.f32.vlgmr.msra.gmra.mrb[4].mxu1 %vm11_vm1, %v819_v42  ;;  %v1020_v56 = vld [vmem:[#allocation2 + $0x8] sm:$0xff] }
 0x1f5   :  { %1853 = vmatpush3.bf16.msra.mxu1 %v1850_v12  ;;  %v1023_v59 = vld [vmem:[#allocation2 + $0x28] sm:$0xff] }
 0x1f6   :  { %v820_v46 = vld [vmem:[#allocation2 + $0x1e] sm:$0xff]  ;;  %1855 = vmatprep.subr.bf16.mxu1 %v1854_v43  ;;  %v821_v47 = vld [vmem:[#allocation2 + $0x26] sm:$0xff] }
 0x1f7   :  { %1745 = vmatprep.mubr.msk.f32.mxu1 %vm11_vm1, %v820_v46  ;;  %v812_v54 = vld [vmem:[#allocation2 + $0x1c] sm:$0xff]  ;;  %v813_v55 = vld [vmem:[#allocation2 + $0x24] sm:$0xff] }
 0x1f8   :  { %1746 = vmatmul.mubr.msk.f32.gmra.mrb[6].mxu1 %vm11_vm1, %v821_v47  ;;  %v1022_v58 = vld [vmem:[#allocation2 + $0x20] sm:$0xff] }
 0x1f9   :  { %1857 = vmatpush3.bf16.msra.mxu1 %v1854_v43  ;;  %1756 = vmatprep.mubr.msk.f32.mxu1 %vm11_vm1, %v810_v51 }
 0x1fa   :  { %1859 = vmatprep.subr.bf16.mxu1 %v1858_v48 }
 0x1fc   :  { %1757 = vmatmul.mubr.msk.f32.vlgmr.msra.gmra.mrb[4].mxu1 %vm11_vm1, %v811_v53 }
 0x1fd   :  { %1861 = vmatpush3.bf16.msra.mxu1 %v1858_v48  ;;  %1759 = vmatprep.mubr.msk.f32.mxu1 %vm11_vm1, %v812_v54  ;;  %v1565_v54 = vld [vmem:[%s2182_s1 + $0x134] ss:$0 sm:$0xff] }
 0x1fe   :  { %1863 = vmatprep.subr.bf16.mxu1 %v1862_v52 }
 0x200   :  { %1760 = vmatmul.mubr.msk.f32.gmra.mrb[6].mxu1 %vm11_vm1, %v813_v55 }
 0x201   :  { %1865 = vmatpush3.bf16.msra.mxu1 %v1862_v52  ;;  %1770 = vmatprep.mubr.msk.f32.mxu1 %vm11_vm1, %v1020_v56 }
 0x204   :  { %1771 = vmatmul.mubr.msk.f32.vlgmr.msra.gmra.mrb[4].mxu1 %vm11_vm1, %v1021_v57 }
 0x205   :  { %1773 = vmatprep.mubr.msk.f32.mxu1 %vm11_vm1, %v1022_v58 }
 0x208   :  { %1774 = vmatmul.mubr.msk.f32.gmra.mrb[6].mxu1 %vm11_vm1, %v1023_v59 }
 0x2d7   :  { %v1772_v6 = vpop.f32.mrb[4].mxu1 }
 0x2d8   :  { %v1135_v7 = vadd.f32 %v1772_v6, %v1552_v5  ;;  %v1106_v8 = vpop.f32.mrb[5].mxu1 }
 0x2d9   :  { %v1134_v9 = vadd.f32 %v1552_v5, %v1106_v8 }
 0x2da   :  { %v1139_v10 = vmax.f32 %v1135_v7, 0.0 }
 0x2db   :  { %v1138_v11 = vmax.f32 %v1134_v9, 0.0  ;;  %v1775_v12 = vpop.f32.mrb[6].mxu1 }
 0x2dc   :  { %1143 = vst.msk [vmem:[#allocation2 + $0x10] sm:$0xff] %vm11_vm1, %v1139_v10  ;;  %v1137_v13 = vadd.f32 %v1775_v12, %v1552_v5  ;;  %v1116_v14 = vpop.f32.mrb[7].mxu1 }
 0x2dd   :  { %1142 = vst.msk [vmem:[#allocation2 + $0x8] sm:$0xff] %vm11_vm1, %v1138_v11  ;;  %v1136_v15 = vadd.f32 %v1552_v5, %v1116_v14 }
 0x2de   :  { %v1141_v16 = vmax.f32 %v1137_v13, 0.0 }
 0x2df   :  { %v1140_v17 = vmax.f32 %v1136_v15, 0.0 }
 0x2e0   :  { %1145 = vst.msk [vmem:[#allocation2 + $0x28] sm:$0xff] %vm11_vm1, %v1141_v16 }
 0x2e1   :  { %1144 = vst.msk [vmem:[#allocation2 + $0x20] sm:$0xff] %vm11_vm1, %v1140_v17 }
 0x2e3   :  { %v1353_v40 = vld [vmem:[#allocation2 + $0x10] sm:$0xff] }
 0x2e4   :  { %v1154_v20 = vld [vmem:[#allocation2 + $0x6] sm:$0xff]  ;;  %v1155_v21 = vld [vmem:[#allocation2 + $0xe] sm:$0xff] }
 0x2e5   :  { %1784 = vmatprep.mubr.msk.f32.mxu0 %vm11_vm1, %v1154_v20  ;;  %v1146_v32 = vld [vmem:[#allocation2 + $0x4] sm:$0xff]  ;;  %v1147_v34 = vld [vmem:[#allocation2 + $0xc] sm:$0xff] }
 0x2e6   :  { %1785 = vmatmul.mubr.msk.f32.vlgmr.msra.gmra.mrb[8].mxu0 %vm11_vm1, %v1155_v21  ;;  %v1352_v39 = vld [vmem:[#allocation2 + $0x8] sm:$0xff] }
 0x2e7   :  { %1877 = vmatpush3.bf16.msra.mxu0 %v1874_v4  ;;  %v1355_v42 = vld [vmem:[#allocation2 + $0x28] sm:$0xff] }
 0x2e8   :  { %v1156_v26 = vld [vmem:[#allocation2 + $0x1e] sm:$0xff]  ;;  %1879 = vmatprep.subr.bf16.mxu0 %v1878_v22  ;;  %v1157_v27 = vld [vmem:[#allocation2 + $0x26] sm:$0xff] }
 0x2e9   :  { %1787 = vmatprep.mubr.msk.f32.mxu0 %vm11_vm1, %v1156_v26  ;;  %v1148_v36 = vld [vmem:[#allocation2 + $0x1c] sm:$0xff]  ;;  %v1149_v38 = vld [vmem:[#allocation2 + $0x24] sm:$0xff] }
 0x2ea   :  { %1788 = vmatmul.mubr.msk.f32.gmra.mrb[10].mxu0 %vm11_vm1, %v1157_v27  ;;  %v1354_v41 = vld [vmem:[#allocation2 + $0x20] sm:$0xff] }
 0x2eb   :  { %1881 = vmatpush3.bf16.msra.mxu0 %v1878_v22  ;;  %1798 = vmatprep.mubr.msk.f32.mxu0 %vm11_vm1, %v1146_v32 }
 0x2ec   :  { %1883 = vmatprep.subr.bf16.mxu0 %v1882_v28 }
 0x2ee   :  { %1799 = vmatmul.mubr.msk.f32.vlgmr.msra.gmra.mrb[12].mxu0 %vm11_vm1, %v1147_v34 }
 0x2ef   :  { %1885 = vmatpush3.bf16.msra.mxu0 %v1882_v28  ;;  %1801 = vmatprep.mubr.msk.f32.mxu0 %vm11_vm1, %v1148_v36 }
 0x2f0   :  { %1887 = vmatprep.subr.bf16.mxu0 %v1886_v33 }
 0x2f2   :  { %1802 = vmatmul.mubr.msk.f32.gmra.mrb[14].mxu0 %vm11_vm1, %v1149_v38 }
 0x2f3   :  { %1889 = vmatpush3.bf16.msra.mxu0 %v1886_v33  ;;  %1812 = vmatprep.mubr.msk.f32.mxu0 %vm11_vm1, %v1352_v39 }
 0x2f6   :  { %1813 = vmatmul.mubr.msk.f32.vlgmr.msra.gmra.mrb[16].mxu0 %vm11_vm1, %v1353_v40 }
 0x2f7   :  { %1815 = vmatprep.mubr.msk.f32.mxu0 %vm11_vm1, %v1354_v41 }
 0x2fa   :  { %1816 = vmatmul.mubr.msk.f32.gmra.mrb[18].mxu0 %vm11_vm1, %v1355_v42 }
 0x3b9   :  { %v1786_v43 = vpop.f32.mrb[8].mxu0 }
 0x3ba   :  { %v1240_v44 = vpop.f32.mrb[9].mxu0 }
 0x3bd   :  { %v1789_v45 = vpop.f32.mrb[10].mxu0 }
 0x3be   :  { %v1249_v46 = vpop.f32.mrb[11].mxu0 }
 0x3c1   :  { %v1800_v47 = vpop.f32.mrb[12].mxu0 }
 0x3c2   :  { %v1340_v48 = vadd.f32 %v1800_v47, %v1786_v43  ;;  %v1335_v49 = vpop.f32.mrb[13].mxu0 }
 0x3c5   :  { %v1803_v50 = vpop.f32.mrb[14].mxu0 }
 0x3c6   :  { %v1349_v51 = vadd.f32 %v1803_v50, %v1789_v45  ;;  %v1344_v52 = vpop.f32.mrb[15].mxu0 }
 0x3c9   :  { %v1814_v53 = vpop.f32.mrb[16].mxu0 }
 0x3ca   :  { %v1455_v55 = vadd.f32 %v1814_v53, %v1340_v48  ;;  %v1438_v56 = vpop.f32.mrb[17].mxu0 }
 0x3cc   :  { %v1462_v57 = vadd.f32 %v1565_v54, %v1455_v55 }
 0x3cd   :  { %v1817_v58 = vpop.f32.mrb[18].mxu0 }
 0x3ce   :  { %v1464_v59 = vmax.f32 %v1462_v57, 0.0  ;;  %v1456_v60 = vadd.f32 %v1817_v58, %v1349_v51  ;;  %v1447_v61 = vpop.f32.mrb[19].mxu0 }
 0x3d0   :  { %v1463_v62 = vadd.f32 %v1565_v54, %v1456_v60  ;;  %v1466_v63 = vadd.f32 %v1464_v59, %v803_v31 }
 0x3d2   :  { %v1465_v1 = vmax.f32 %v1463_v62, 0.0  ;;  %v1468_v2 = vmax.f32 %v1466_v63, 0.0 }
 0x3d4   :  { %v1467_v3 = vadd.f32 %v1465_v1, %v805_v37  ;;  %v1475_v4 = vmul.f32 %v1566_v0, %v1468_v2 }
 0x3d6   :  { %v1483_v5 = vsel %vm1482_vm3, %v1475_v4, 0.0  ;;  %v1469_v6 = vmax.f32 %v1467_v3, 0.0 }
 0x3d7   :  { %1484 = vadd.xlane.f32.xlu0 %v1483_v5 }
 0x3d8   :  { %v1476_v7 = vmul.f32 %v1566_v0, %v1469_v6 }
 0x3da   :  { %v1479_v8 = vrot.slane %v1476_v7, 7 }
 0x3dc   :  { %v1487_v9 = vsel %vm1486_vm4, %v1479_v8, 0.0 }
 0x3dd   :  { %1488 = vadd.xlane.f32.xlu0 %v1487_v9 }
 0x464   :  { %v1485_v31 = vpop.xlane.xlu0 %1484 }
 0x465   :  { %v1495_v10 = vadd.f32 %v1567_v24, %v1485_v31 }
 0x467   :  { %1498 = vst.msk [vmem:[%s2184_s2 - $0x7] sm:$0x80] %vm1497_vm5, %v1495_v10 }
 0x46a   :  { %v1489_v35 = vpop.xlane.xlu0 %1488 }
 0x46b   :  { %v1496_v37 = vadd.f32 %v1567_v24, %v1489_v35 }
 0x46d   :  { %1500 = vst.msk [vmem:[%s2184_s2 + $0x1] sm:$0x1] %vm1499_vm6, %v1496_v37 }

</bundles_post_ra>
